<compile_context>
chip_gen: v5e
topology: v5e:2x2
jax: 0.10.0
libtpu: 0.0.40
codegen_flags: <defaults>
</compile_context>

<pallas_src>
import numpy as np
import jax
import jax.numpy as jnp
from jax.experimental import pallas as pl
from jax.experimental.pallas import tpu as pltpu

BN_EPS = 1e-5


# ----------------------------------------------------------------------------- kernel
def fused_ctx_pred_kernel(x_ref, scale0_ref, shift0_ref, cw_ref, cb_ref,
                          sel_ref, wy_ref, by_ref, wx_ref, bx_ref,
                          y_out_ref, x_out_ref):
    # x_ref: (tb*49, C) unique 7x7 pixels, rows = b_local*49 + y*7 + x.
    # BN0(eval) -> ReLU -> conv0(+BN1 folded) -> ReLU -> conv1(+BN2 folded)
    # -> ReLU -> conv2, all per unique pixel (no 9x patch redundancy).
    h = jnp.maximum(x_ref[...] * scale0_ref[...] + shift0_ref[...], 0.0)
    h = jnp.dot(h, cw_ref[0], preferred_element_type=jnp.float32) + cb_ref[0:1, :]
    h = jnp.maximum(h, 0.0)
    h = jnp.dot(h, cw_ref[1], preferred_element_type=jnp.float32) + cb_ref[1:2, :]
    h = jnp.maximum(h, 0.0)
    h = jnp.dot(h, cw_ref[2], preferred_element_type=jnp.float32) + cb_ref[2:3, :]

    # Fused 3x3 average pool + yp/xp context selection: one constant matmul.
    # Rows [0, tb*10) = yp contexts, rows [tb*10, tb*20) = xp contexts.
    sel = jnp.dot(sel_ref[...], h, preferred_element_type=jnp.float32)
    half = sel.shape[0] // 2
    yp = sel[:half]
    xp = sel[half:]

    # 3 y-heads / 3 x-heads as two lane-packed (C, NP) matmuls; each output is a
    # single full-block, lane-dense (NP % 128 == 0) store.
    y_out_ref[...] = (jnp.dot(yp, wy_ref[...], preferred_element_type=jnp.float32)
                      + by_ref[...]).astype(y_out_ref.dtype)
    x_out_ref[...] = (jnp.dot(xp, wx_ref[...], preferred_element_type=jnp.float32)
                      + bx_ref[...]).astype(x_out_ref.dtype)


# ----------------------------------------------------------------------------- wrapper helpers
def _pick_batch_tile(B, batch_tile=None):
    if batch_tile is None:
        # Biggest tile that keeps tb*49 rows sublane-aligned (tb % 8 == 0) while
        # leaving >= 2 grid steps (so v7x's two TensorCores both get work under
        # "parallel" semantics); otherwise one full-batch tile (block == full
        # array, alignment trivially satisfied).
        batch_tile = next((t for t in (32, 16, 8) if B % t == 0 and B // t >= 2), B)
    assert B % batch_tile == 0
    assert batch_tile == B or (batch_tile * 49) % 8 == 0, (
        "batch_tile must be a multiple of 8 (sublane alignment) or cover the whole batch")
    return batch_tile


def _pool_select_matrix(tb):
    """Constant (tb*20, tb*49) matrix folding the 3x3 mean pool and yp/xp selection.

    Row layout: rows [0, tb*10)  -> yp contexts (b_local*10 + y1*5 + x1, y1 in {0,1})
                rows [tb*10, ..) -> xp contexts (b_local*10 + y1*2 + x1, x1 in {0,1})
    Each row has nine 1/9 entries at the pixel columns of its 3x3 patch.
    """
    S = np.zeros((tb * 20, tb * 49), np.float32)
    w = 1.0 / 9.0
    for bl in range(tb):
        for y1 in range(2):                       # yp: y location in {1, 2}
            for x1 in range(5):
                r = bl * 10 + y1 * 5 + x1
                for dy in range(3):
                    for dx in range(3):
                        S[r, bl * 49 + (y1 + dy) * 7 + (x1 + dx)] = w
        for y1 in range(5):                       # xp: x location in {1, 2}
            for x1 in range(2):
                r = tb * 10 + bl * 10 + y1 * 2 + x1
                for dy in range(3):
                    for dx in range(3):
                        S[r, bl * 49 + (y1 + dy) * 7 + (x1 + dx)] = w
    return jnp.asarray(S)


def _packed_head_weights(w_t, b, C, NP):
    """Pack 3 Linears (w_t: (3, Cin, Cout)) into (C, NP) / (1, NP), zero-padded lanes."""
    w_p = jnp.transpose(w_t, (1, 0, 2)).reshape(C, 3 * C)
    b_p = b.reshape(1, 3 * C)
    pad = NP - 3 * C
    if pad:
        w_p = jnp.pad(w_p, ((0, 0), (0, pad)))
        b_p = jnp.pad(b_p, ((0, 0), (0, pad)))
    return w_p, b_p


def fused_pallas(x_flat, scale0, shift0, cw_f, cb_f, sel, wy_p, by_p, wx_p, bx_p, *, tb):
    n_rows, C = x_flat.shape
    B = n_rows // 49
    NP = wy_p.shape[1]
    return pl.pallas_call(
        fused_ctx_pred_kernel,
        out_shape=(jax.ShapeDtypeStruct((B * 10, NP), jnp.float32),
                   jax.ShapeDtypeStruct((B * 10, NP), jnp.float32)),
        grid=(B // tb,),
        in_specs=[
            pl.BlockSpec((tb * 49, C), lambda i: (i, 0)),        # unique pixels (batch-tiled)
            pl.BlockSpec((1, C), lambda i: (0, 0)),              # BN0 scale
            pl.BlockSpec((1, C), lambda i: (0, 0)),              # BN0 shift
            pl.BlockSpec((3, C, C), lambda i: (0, 0, 0)),        # conv weights (BN1/2 folded)
            pl.BlockSpec((3, C), lambda i: (0, 0)),              # conv biases  (BN1/2 folded)
            pl.BlockSpec((tb * 20, tb * 49), lambda i: (0, 0)),  # pool + select constant
            pl.BlockSpec((C, NP), lambda i: (0, 0)),             # packed y-head weights
            pl.BlockSpec((1, NP), lambda i: (0, 0)),             # packed y-head bias
            pl.BlockSpec((C, NP), lambda i: (0, 0)),             # packed x-head weights
            pl.BlockSpec((1, NP), lambda i: (0, 0)),             # packed x-head bias
        ],
        out_specs=[pl.BlockSpec((tb * 10, NP), lambda i: (i, 0)),
                   pl.BlockSpec((tb * 10, NP), lambda i: (i, 0))],
        compiler_params=pltpu.CompilerParams(
            dimension_semantics=("parallel",),
            vmem_limit_bytes=32 * 1024 * 1024,
        ),
    )(x_flat, scale0, shift0, cw_f, cb_f, sel, wy_p, by_p, wx_p, bx_p)


def xp_patch_indices():
    return [p for p in range(25) if p % 5 in (0, 1)]


def compute_locs(B):
    yp_locs = np.array([[p // 5 + 1, p % 5 + 1] for p in range(10)
                        for _ in range(B)], dtype=np.int32)
    xp_locs = np.array([[p // 5 + 1, p % 5 + 1] for p in xp_patch_indices()
                        for _ in range(B)], dtype=np.int32)
    blocks = [yp_locs + np.array([s + 2, 0], np.int32) for s in range(3)]
    blocks += [xp_locs + np.array([0, s + 2], np.int32) for s in range(3)]
    return jnp.asarray(np.concatenate(blocks, axis=0))           # (60B, 2) int32


def context_prediction_forward(x, params, *, batch_tile=None):
    B, C, H, W = x.shape
    assert H >= 7 and W >= 7
    tb = _pick_batch_tile(B, batch_tile)

    # Only the top-left 7x7 region is ever read (5x5 patch origins x 3x3 patches);
    # flatten to channels-last rows (b*49 + y*7 + x) -- free layout work in XLA.
    x_flat = jnp.transpose(x[:, :, :7, :7], (0, 2, 3, 1)).reshape(B * 49, C)

    # BN(eval) affine; fold layers 1 and 2 into the preceding conv (exact).
    scale = params["bn_gamma"] / jnp.sqrt(params["bn_var"] + BN_EPS)     # (3, C)
    shift = params["bn_beta"] - params["bn_mean"] * scale
    cw_t, cb = params["conv_w_t"], params["conv_b"]
    cw_f = jnp.stack([cw_t[0] * scale[1][None, :],
                      cw_t[1] * scale[2][None, :],
                      cw_t[2]])
    cb_f = jnp.stack([cb[0] * scale[1] + shift[1],
                      cb[1] * scale[2] + shift[2],
                      cb[2]])
    scale0, shift0 = scale[0:1], shift[0:1]

    NP = ((3 * C + 127) // 128) * 128            # lane-dense (unmasked) output width
    wy_p, by_p = _packed_head_weights(params["wy_t"], params["by"], C, NP)
    wx_p, bx_p = _packed_head_weights(params["wx_t"], params["bx"], C, NP)
    sel = _pool_select_matrix(tb)

    y_out, x_out = fused_pallas(x_flat, scale0, shift0, cw_f, cb_f, sel,
                                wy_p, by_p, wx_p, bx_p, tb=tb)

    # (B*10, NP): row = b*10 + patch, lane block s*C:(s+1)*C = head s.
    # Reorder to the torch layout (60B, C) = [head, patch, batch] with free XLA ops.
    def unpack(o):
        return jnp.transpose(o[:, :3 * C].reshape(B, 10, 3, C),
                             (2, 1, 0, 3)).reshape(30 * B, C)
    preds = jnp.concatenate([unpack(y_out), unpack(x_out)], axis=0)
    return preds, compute_locs(B)


# ----------------------------------------------------------------------------- params
def init_params(key, C):
    ks = jax.random.split(key, 10)
    conv_w = jax.random.normal(ks[4], (3, C, C), jnp.float32) / np.sqrt(C)   # (Cout,Cin)
    wy = jax.random.normal(ks[6], (3, C, C), jnp.float32) / np.sqrt(C)       # (out,in)
    wx = jax.random.normal(ks[8], (3, C, C), jnp.float32) / np.sqrt(C)
    return dict(
        bn_gamma=1.0 + 0.1 * jax.random.normal(ks[0], (3, C), jnp.float32),
        bn_beta=0.1 * jax.random.normal(ks[1], (3, C), jnp.float32),
        bn_mean=0.05 * jax.random.normal(ks[2], (3, C), jnp.float32),
        bn_var=1.0 + 0.1 * jax.random.uniform(ks[3], (3, C), dtype=jnp.float32),
        conv_w_t=jnp.transpose(conv_w, (0, 2, 1)),
        conv_b=0.1 * jax.random.normal(ks[5], (3, C), jnp.float32),
        wy_t=jnp.transpose(wy, (0, 2, 1)),
        by=0.1 * jax.random.normal(ks[7], (3, C), jnp.float32),
        wx_t=jnp.transpose(wx, (0, 2, 1)),
        bx=0.1 * jax.random.normal(ks[9], (3, C), jnp.float32),
    )


# ----------------------------------------------------------------------------- pure-JAX reference
def extract_patches(x):
    """x: (B, C, H, W) NCHW -> (25*B*9, C) channels-last flattened 3x3 patches."""
    B, C, H, W = x.shape
    pats = []
    for y1 in range(5):
        for x1 in range(5):
            pats.append(x[:, :, y1:y1 + 3, x1:x1 + 3])           # (B, C, 3, 3)
    z = jnp.concatenate(pats, axis=0)                            # (25B, C, 3, 3)
    return jnp.transpose(z, (0, 2, 3, 1)).reshape(25 * B * 9, C)


def reference_forward(x, params):
    B, C = x.shape[0], x.shape[1]
    h = extract_patches(x)
    scale = params["bn_gamma"] / jnp.sqrt(params["bn_var"] + BN_EPS)
    shift = params["bn_beta"] - params["bn_mean"] * scale
    for l in range(3):
        h = jnp.maximum(h * scale[l] + shift[l], 0.0)
        h = h @ params["conv_w_t"][l] + params["conv_b"][l]
    ctx = h.reshape(25 * B, 9, C).mean(axis=1)
    yp = ctx[:10 * B]
    xp_rows = jnp.asarray([p * B + b for p in xp_patch_indices() for b in range(B)])
    xp = ctx[xp_rows]
    preds = [yp @ params["wy_t"][s] + params["by"][s] for s in range(3)]
    preds += [xp @ params["wx_t"][s] + params["bx"][s] for s in range(3)]
    return jnp.concatenate(preds, axis=0), compute_locs(B)


# ----------------------------------------------------------------------------- main
if __name__ == "__main__":
    key = jax.random.PRNGKey(0)
    kx, kp = jax.random.split(key)
    B, C, H, W = 2, 16, 8, 8            # in_channels = 16; forward needs H, W >= 7
    x = jax.random.normal(kx, (B, C, H, W), jnp.float32)
    params = init_params(kp, C)

    preds, locs = context_prediction_forward(x, params)
    preds = jax.block_until_ready(preds)
    locs = jax.block_until_ready(locs)

    ref_preds, ref_locs = reference_forward(x, params)
    assert preds.shape == (60 * B, C) and locs.shape == (60 * B, 2)
    np.testing.assert_allclose(np.asarray(preds), np.asarray(ref_preds),
                               rtol=1e-4, atol=1e-4)
    np.testing.assert_array_equal(np.asarray(locs), np.asarray(ref_locs))
    print("KERNEL_OK")
</pallas_src>

<mosaic_0001>
module attributes {stable_mosaic.version = 11 : i64} {
  func.func @fused_ctx_pred_kernel(%arg0: i32, %arg1: memref<98x16xf32, #tpu.memory_space<vmem>>, %arg2: memref<1x16xf32, #tpu.memory_space<vmem>>, %arg3: memref<1x16xf32, #tpu.memory_space<vmem>>, %arg4: memref<3x16x16xf32, #tpu.memory_space<vmem>>, %arg5: memref<3x16xf32, #tpu.memory_space<vmem>>, %arg6: memref<40x98xf32, #tpu.memory_space<vmem>>, %arg7: memref<16x128xf32, #tpu.memory_space<vmem>>, %arg8: memref<1x128xf32, #tpu.memory_space<vmem>>, %arg9: memref<16x128xf32, #tpu.memory_space<vmem>>, %arg10: memref<1x128xf32, #tpu.memory_space<vmem>>, %arg11: memref<20x128xf32, #tpu.memory_space<vmem>>, %arg12: memref<20x128xf32, #tpu.memory_space<vmem>>) attributes {dimension_semantics = [#tpu.dimension_semantics<parallel>], iteration_bounds = array<i64: 1>, scalar_prefetch = 0 : i64, scratch_operands = 0 : i64, tpu.core_type = #tpu.core_type<tc>, window_params = [{transform_indices = @transform_0, window_bounds = array<i64: 98, 16>}, {pipeline_mode = #tpu.pipeline_mode<synchronous>, transform_indices = @transform_1, window_bounds = array<i64: 1, 16>}, {pipeline_mode = #tpu.pipeline_mode<synchronous>, transform_indices = @transform_2, window_bounds = array<i64: 1, 16>}, {pipeline_mode = #tpu.pipeline_mode<synchronous>, transform_indices = @transform_3, window_bounds = array<i64: 3, 16, 16>}, {pipeline_mode = #tpu.pipeline_mode<synchronous>, transform_indices = @transform_4, window_bounds = array<i64: 3, 16>}, {pipeline_mode = #tpu.pipeline_mode<synchronous>, transform_indices = @transform_5, window_bounds = array<i64: 40, 98>}, {pipeline_mode = #tpu.pipeline_mode<synchronous>, transform_indices = @transform_6, window_bounds = array<i64: 16, 128>}, {pipeline_mode = #tpu.pipeline_mode<synchronous>, transform_indices = @transform_7, window_bounds = array<i64: 1, 128>}, {pipeline_mode = #tpu.pipeline_mode<synchronous>, transform_indices = @transform_8, window_bounds = array<i64: 16, 128>}, {pipeline_mode = #tpu.pipeline_mode<synchronous>, transform_indices = @transform_9, window_bounds = array<i64: 1, 128>}, {transform_indices = @transform_10, window_bounds = array<i64: 20, 128>}, {transform_indices = @transform_11, window_bounds = array<i64: 20, 128>}]} {
    %c0 = arith.constant 0 : index
    %c0_0 = arith.constant 0 : index
    %0 = vector.load %arg1[%c0, %c0_0] : memref<98x16xf32, #tpu.memory_space<vmem>>, vector<98x16xf32>
    %c0_1 = arith.constant 0 : index
    %c0_2 = arith.constant 0 : index
    %1 = vector.load %arg2[%c0_1, %c0_2] : memref<1x16xf32, #tpu.memory_space<vmem>>, vector<1x16xf32>
    %2 = vector.broadcast %1 : vector<1x16xf32> to vector<98x16xf32>
    %3 = arith.mulf %0, %2 : vector<98x16xf32>
    %c0_3 = arith.constant 0 : index
    %c0_4 = arith.constant 0 : index
    %4 = vector.load %arg3[%c0_3, %c0_4] : memref<1x16xf32, #tpu.memory_space<vmem>>, vector<1x16xf32>
    %5 = vector.broadcast %4 : vector<1x16xf32> to vector<98x16xf32>
    %6 = arith.addf %3, %5 : vector<98x16xf32>
    %cst = arith.constant 0.000000e+00 : f32
    %7 = vector.broadcast %cst : f32 to vector<98x16xf32>
    %8 = arith.maximumf %6, %7 : vector<98x16xf32>
    %c0_5 = arith.constant 0 : index
    %c0_6 = arith.constant 0 : index
    %c0_7 = arith.constant 0 : index
    %9 = vector.load %arg4[%c0_5, %c0_6, %c0_7] : memref<3x16x16xf32, #tpu.memory_space<vmem>>, vector<1x16x16xf32>
    %10 = vector.shape_cast %9 : vector<1x16x16xf32> to vector<16x16xf32>
    %cst_8 = arith.constant dense<0.000000e+00> : vector<98x16xf32>
    %11 = tpu.matmul %8, %10, %cst_8 {dimension_numbers = #tpu.dot_dimension_numbers<[1], [0], [0], [1], [0, 0, 1, 1], [], []>} : vector<98x16xf32>, vector<16x16xf32>, vector<98x16xf32> -> vector<98x16xf32>
    %c0_9 = arith.constant 0 : index
    %c0_10 = arith.constant 0 : index
    %12 = vector.load %arg5[%c0_9, %c0_10] : memref<3x16xf32, #tpu.memory_space<vmem>>, vector<1x16xf32>
    %13 = vector.broadcast %12 : vector<1x16xf32> to vector<98x16xf32>
    %14 = arith.addf %11, %13 : vector<98x16xf32>
    %cst_11 = arith.constant 0.000000e+00 : f32
    %15 = vector.broadcast %cst_11 : f32 to vector<98x16xf32>
    %16 = arith.maximumf %14, %15 : vector<98x16xf32>
    %c1 = arith.constant 1 : index
    %c0_12 = arith.constant 0 : index
    %c0_13 = arith.constant 0 : index
    %17 = vector.load %arg4[%c1, %c0_12, %c0_13] : memref<3x16x16xf32, #tpu.memory_space<vmem>>, vector<1x16x16xf32>
    %18 = vector.shape_cast %17 : vector<1x16x16xf32> to vector<16x16xf32>
    %cst_14 = arith.constant dense<0.000000e+00> : vector<98x16xf32>
    %19 = tpu.matmul %16, %18, %cst_14 {dimension_numbers = #tpu.dot_dimension_numbers<[1], [0], [0], [1], [0, 0, 1, 1], [], []>} : vector<98x16xf32>, vector<16x16xf32>, vector<98x16xf32> -> vector<98x16xf32>
    %c1_15 = arith.constant 1 : index
    %c0_16 = arith.constant 0 : index
    %20 = vector.load %arg5[%c1_15, %c0_16] : memref<3x16xf32, #tpu.memory_space<vmem>>, vector<1x16xf32>
    %21 = vector.broadcast %20 : vector<1x16xf32> to vector<98x16xf32>
    %22 = arith.addf %19, %21 : vector<98x16xf32>
    %cst_17 = arith.constant 0.000000e+00 : f32
    %23 = vector.broadcast %cst_17 : f32 to vector<98x16xf32>
    %24 = arith.maximumf %22, %23 : vector<98x16xf32>
    %c2 = arith.constant 2 : index
    %c0_18 = arith.constant 0 : index
    %c0_19 = arith.constant 0 : index
    %25 = vector.load %arg4[%c2, %c0_18, %c0_19] : memref<3x16x16xf32, #tpu.memory_space<vmem>>, vector<1x16x16xf32>
    %26 = vector.shape_cast %25 : vector<1x16x16xf32> to vector<16x16xf32>
    %cst_20 = arith.constant dense<0.000000e+00> : vector<98x16xf32>
    %27 = tpu.matmul %24, %26, %cst_20 {dimension_numbers = #tpu.dot_dimension_numbers<[1], [0], [0], [1], [0, 0, 1, 1], [], []>} : vector<98x16xf32>, vector<16x16xf32>, vector<98x16xf32> -> vector<98x16xf32>
    %c2_21 = arith.constant 2 : index
    %c0_22 = arith.constant 0 : index
    %28 = vector.load %arg5[%c2_21, %c0_22] : memref<3x16xf32, #tpu.memory_space<vmem>>, vector<1x16xf32>
    %29 = vector.broadcast %28 : vector<1x16xf32> to vector<98x16xf32>
    %30 = arith.addf %27, %29 : vector<98x16xf32>
    %c0_23 = arith.constant 0 : index
    %c0_24 = arith.constant 0 : index
    %31 = vector.load %arg6[%c0_23, %c0_24] : memref<40x98xf32, #tpu.memory_space<vmem>>, vector<40x98xf32>
    %cst_25 = arith.constant dense<0.000000e+00> : vector<40x16xf32>
    %32 = tpu.matmul %31, %30, %cst_25 {dimension_numbers = #tpu.dot_dimension_numbers<[1], [0], [0], [1], [0, 0, 1, 1], [], []>} : vector<40x98xf32>, vector<98x16xf32>, vector<40x16xf32> -> vector<40x16xf32>
    %33 = vector.extract_strided_slice %32 {offsets = [0, 0], sizes = [20, 16], strides = [1, 1]} : vector<40x16xf32> to vector<20x16xf32>
    %34 = vector.extract_strided_slice %32 {offsets = [20, 0], sizes = [20, 16], strides = [1, 1]} : vector<40x16xf32> to vector<20x16xf32>
    %c0_26 = arith.constant 0 : index
    %c0_27 = arith.constant 0 : index
    %35 = vector.load %arg7[%c0_26, %c0_27] : memref<16x128xf32, #tpu.memory_space<vmem>>, vector<16x128xf32>
    %cst_28 = arith.constant dense<0.000000e+00> : vector<20x128xf32>
    %36 = tpu.matmul %33, %35, %cst_28 {dimension_numbers = #tpu.dot_dimension_numbers<[1], [0], [0], [1], [0, 0, 1, 1], [], []>} : vector<20x16xf32>, vector<16x128xf32>, vector<20x128xf32> -> vector<20x128xf32>
    %c0_29 = arith.constant 0 : index
    %c0_30 = arith.constant 0 : index
    %37 = vector.load %arg8[%c0_29, %c0_30] : memref<1x128xf32, #tpu.memory_space<vmem>>, vector<1x128xf32>
    %38 = vector.broadcast %37 : vector<1x128xf32> to vector<20x128xf32>
    %39 = arith.addf %36, %38 : vector<20x128xf32>
    %c0_31 = arith.constant 0 : index
    %c0_32 = arith.constant 0 : index
    %40 = vector.load %arg11[%c0_31, %c0_32] : memref<20x128xf32, #tpu.memory_space<vmem>>, vector<20x128xf32>
    tpu.vector_store %arg11[%c0_31, %c0_32], %39 {strides = array<i32>} : memref<20x128xf32, #tpu.memory_space<vmem>>, vector<20x128xf32>,
    %c0_33 = arith.constant 0 : index
    %c0_34 = arith.constant 0 : index
    %41 = vector.load %arg9[%c0_33, %c0_34] : memref<16x128xf32, #tpu.memory_space<vmem>>, vector<16x128xf32>
    %cst_35 = arith.constant dense<0.000000e+00> : vector<20x128xf32>
    %42 = tpu.matmul %34, %41, %cst_35 {dimension_numbers = #tpu.dot_dimension_numbers<[1], [0], [0], [1], [0, 0, 1, 1], [], []>} : vector<20x16xf32>, vector<16x128xf32>, vector<20x128xf32> -> vector<20x128xf32>
    %c0_36 = arith.constant 0 : index
    %c0_37 = arith.constant 0 : index
    %43 = vector.load %arg10[%c0_36, %c0_37] : memref<1x128xf32, #tpu.memory_space<vmem>>, vector<1x128xf32>
    %44 = vector.broadcast %43 : vector<1x128xf32> to vector<20x128xf32>
    %45 = arith.addf %42, %44 : vector<20x128xf32>
    %c0_38 = arith.constant 0 : index
    %c0_39 = arith.constant 0 : index
    %46 = vector.load %arg12[%c0_38, %c0_39] : memref<20x128xf32, #tpu.memory_space<vmem>>, vector<20x128xf32>
    tpu.vector_store %arg12[%c0_38, %c0_39], %45 {strides = array<i32>} : memref<20x128xf32, #tpu.memory_space<vmem>>, vector<20x128xf32>,
    return
  }
  func.func @transform_0(%arg0: i32) -> (i32, i32) {
    %c0_i32 = arith.constant 0 : i32
    %c0_i32_0 = arith.constant 0 : i32
    return %arg0, %c0_i32 : i32, i32
  }
  func.func @transform_1(%arg0: i32) -> (i32, i32) {
    %c0_i32 = arith.constant 0 : i32
    %c0_i32_0 = arith.constant 0 : i32
    %c0_i32_1 = arith.constant 0 : i32
    return %c0_i32, %c0_i32_0 : i32, i32
  }
  func.func @transform_2(%arg0: i32) -> (i32, i32) {
    %c0_i32 = arith.constant 0 : i32
    %c0_i32_0 = arith.constant 0 : i32
    %c0_i32_1 = arith.constant 0 : i32
    return %c0_i32, %c0_i32_0 : i32, i32
  }
  func.func @transform_3(%arg0: i32) -> (i32, i32, i32) {
    %c0_i32 = arith.constant 0 : i32
    %c0_i32_0 = arith.constant 0 : i32
    %c0_i32_1 = arith.constant 0 : i32
    %c0_i32_2 = arith.constant 0 : i32
    return %c0_i32, %c0_i32_0, %c0_i32_1 : i32, i32, i32
  }
  func.func @transform_4(%arg0: i32) -> (i32, i32) {
    %c0_i32 = arith.constant 0 : i32
    %c0_i32_0 = arith.constant 0 : i32
    %c0_i32_1 = arith.constant 0 : i32
    return %c0_i32, %c0_i32_0 : i32, i32
  }
  func.func @transform_5(%arg0: i32) -> (i32, i32) {
    %c0_i32 = arith.constant 0 : i32
    %c0_i32_0 = arith.constant 0 : i32
    %c0_i32_1 = arith.constant 0 : i32
    return %c0_i32, %c0_i32_0 : i32, i32
  }
  func.func @transform_6(%arg0: i32) -> (i32, i32) {
    %c0_i32 = arith.constant 0 : i32
    %c0_i32_0 = arith.constant 0 : i32
    %c0_i32_1 = arith.constant 0 : i32
    return %c0_i32, %c0_i32_0 : i32, i32
  }
  func.func @transform_7(%arg0: i32) -> (i32, i32) {
    %c0_i32 = arith.constant 0 : i32
    %c0_i32_0 = arith.constant 0 : i32
    %c0_i32_1 = arith.constant 0 : i32
    return %c0_i32, %c0_i32_0 : i32, i32
  }
  func.func @transform_8(%arg0: i32) -> (i32, i32) {
    %c0_i32 = arith.constant 0 : i32
    %c0_i32_0 = arith.constant 0 : i32
    %c0_i32_1 = arith.constant 0 : i32
    return %c0_i32, %c0_i32_0 : i32, i32
  }
  func.func @transform_9(%arg0: i32) -> (i32, i32) {
    %c0_i32 = arith.constant 0 : i32
    %c0_i32_0 = arith.constant 0 : i32
    %c0_i32_1 = arith.constant 0 : i32
    return %c0_i32, %c0_i32_0 : i32, i32
  }
  func.func @transform_10(%arg0: i32) -> (i32, i32) {
    %c0_i32 = arith.constant 0 : i32
    %c0_i32_0 = arith.constant 0 : i32
    return %arg0, %c0_i32 : i32, i32
  }
  func.func @transform_11(%arg0: i32) -> (i32, i32) {
    %c0_i32 = arith.constant 0 : i32
    %c0_i32_0 = arith.constant 0 : i32
    return %arg0, %c0_i32 : i32, i32
  }
}

</mosaic_0001>

<bundles_post_ra>
// kernel: tpu_custom_call.1
= control target key start
LH: loop header
LB: loop body
LE: loop exit
PB: predicated region body
PF: predicated region fallthrough
CT: control target
= control target key end

     0   :  { %17 = vsyncpa [#allocation3], 0  ;;  %s1029_s0 = inlined_call_operand.vmem [shape: f32[98,16], index: 0, kind: input, shape index: {}]   ;;  %s1030_s1 = inlined_call_operand.hbm [shape: f32[1,16], index: 1, kind: input, shape index: {}]   ;;  %s1031_s2 = inlined_call_operand.vmem [shape: f32[1,16], index: 2, kind: input, shape index: {}]   ;;  %s1032_s3 = inlined_call_operand.vmem [shape: f32[3,16,16], index: 3, kind: input, shape index: {}]   ;;  %s1033_s4 = inlined_call_operand.hbm [shape: f32[3,16], index: 4, kind: input, shape index: {}]   ;;  %s1034_s5 = inlined_call_operand.vmem [shape: f32[40,98], index: 5, kind: input, shape index: {}]   ;;  %s1035_s6 = inlined_call_operand.vmem [shape: f32[16,128], index: 6, kind: input, shape index: {}]   ;;  %s1036_s7 = inlined_call_operand.vmem [shape: f32[1,128], index: 7, kind: input, shape index: {}]   ;;  %s1037_s8 = inlined_call_operand.vmem [shape: f32[16,128], index: 8, kind: input, shape index: {}]   ;;  %s1038_s9 = inlined_call_operand.vmem [shape: f32[1,128], index: 9, kind: input, shape index: {}]   ;;  %s1039_s10 = inlined_call_operand.hbm [shape: f32[20,128], index: 10, kind: output, shape index: {0}]   ;;  %s1040_s11 = inlined_call_operand.hbm [shape: f32[20,128], index: 11, kind: output, shape index: {1}]  }
   0x1   :  { %18 = vsyncpa [#allocation6], 0 }
   0x2   :  { %19 = vsyncpa [#allocation4], 0 }
   0x3   :  { %20 = vsyncpa [#allocation9], 0  ;;  %s28_s19 = sshll.u32 %s1030_s1, 4  ;;  %s813_s20 = smov [#allocation2]   ;;  %s29_s19 = int_to_ptr.hbm [resolvable:$true] %s28_s19 }
   0x4   :  { %s30_s21 = sshll.u32 %s813_s20, 4  ;;  %s43_s24 = sshll.u32 %s1033_s4, 4  ;;  %s31_s21 = int_to_ptr.vmem [resolvable:$true] %s30_s21  ;;  %s44_s24 = int_to_ptr.hbm [resolvable:$true] %s43_s24 }
   0x5   :  { %33 = dma.hbm_to_vmem [thread:$0]  %s29_s19, 16, %s31_s21, [#allocation3]  }
   0x6   :  { %s814_s25 = smov [#allocation5]  }
   0x7   :  { %s45_s26 = sshll.u32 %s814_s25, 4  ;;  %s46_s26 = int_to_ptr.vmem [resolvable:$true] %s45_s26 }
   0x8   :  { %48 = dma.hbm_to_vmem [thread:$0]  %s44_s24, 64, %s46_s26, [#allocation6]  }
   0x9   :  { %805 = dma.done.wait [#allocation3], 16  }
   0xa   :  { %806 = vsyncadd [#allocation3], 4294967280 }
   0xb   :  { %807 = dma.done.wait [#allocation6], 64  }
   0xc   :  { %808 = vsyncadd [#allocation6], 4294967232  ;;  %v128_v0 = vld [vmem:[%s1032_s3 + $0x8] sm:$0xff]  ;;  %v127_v1 = vld [vmem:[%s1032_s3] sm:$0xff]  ;;  %vm131_vm0 = vcmask 130048   ;;  %vm474_vm1 = vcmask 1041408  }
   0xd   :  { %v67_v2 = vld [vmem:[%s1029_s0] sm:$0xff]  ;;  %185 = vmatpush.msra.mxu0 %v128_v0  ;;  %v68_v5 = vld [vmem:[%s1029_s0 + $0x8] sm:$0xff]  ;;  %v69_v11 = vld [vmem:[%s1029_s0 + $0x10] sm:$0xff]  ;;  %vm458_vm2 = vcmask 801792   ;;  %vm562_vm3 = vcmask 1043456   ;;  %s815_s17 = smov [#allocation7]  }
   0xe   :  { %v702_v3 = vld [vmem:[#allocation2] ss:$0 sm:$0xff]  ;;  %v70_v15 = vld [vmem:[%s1029_s0 + $0x18] sm:$0xff]  ;;  %v72_v24 = vld [vmem:[%s1029_s0 + $0x28] sm:$0xff]  ;;  %s609_s19 = sshll.u32 %s1039_s10, 4  ;;  %s816_s20 = smov 128   ;;  %s610_s19 = int_to_ptr.hbm [resolvable:$true] %s609_s19 }
   0xf   :  { %v703_v4 = vld [vmem:[%s1031_s2] ss:$0 sm:$0xff]  ;;  %186 = vmatpush.msra.mxu0 %v127_v1  ;;  %v84_v6 = vmul.f32 %v702_v3, %v67_v2  ;;  %v85_v8 = vmul.f32 %v702_v3, %v68_v5  ;;  %v86_v13 = vmul.f32 %v702_v3, %v69_v11  ;;  %v87_v17 = vmul.f32 %v702_v3, %v70_v15  ;;  %v76_v30 = vld [vmem:[%s1029_s0 + $0x48] sm:$0xff]  ;;  %v73_v31 = vld [vmem:[%s1029_s0 + $0x30] sm:$0xff]  ;;  %s817_s21 = smov 8   ;;  %s818_s22 = smov [#allocation8]  }
  0x10   :  { %v71_v19 = vld [vmem:[%s1029_s0 + $0x20] sm:$0xff]  ;;  %v89_v28 = vmul.f32 %v702_v3, %v72_v24  ;;  %v93_v32 = vmul.f32 %v702_v3, %v76_v30  ;;  %v90_v35 = vmul.f32 %v702_v3, %v73_v31  ;;  %v77_v37 = vld [vmem:[%s1029_s0 + $0x50] sm:$0xff]  ;;  %v74_v38 = vld [vmem:[%s1029_s0 + $0x38] sm:$0xff]  ;;  %s620_s10 = sshll.u32 %s818_s22, 4  ;;  %s622_s25 = sshll.u32 %s1040_s11, 4  ;;  %s621_s10 = int_to_ptr.vmem [resolvable:$true] %s620_s10  ;;  %s623_s25 = int_to_ptr.hbm [resolvable:$true] %s622_s25 }
  0x11   :  { %v101_v7 = vadd.f32 %v703_v4, %v84_v6  ;;  %v102_v10 = vadd.f32 %v703_v4, %v85_v8  ;;  %v103_v14 = vadd.f32 %v703_v4, %v86_v13  ;;  %v104_v18 = vadd.f32 %v703_v4, %v87_v17  ;;  %v75_v23 = vld [vmem:[%s1029_s0 + $0x40] sm:$0xff]  ;;  %v78_v44 = vld [vmem:[%s1029_s0 + $0x58] sm:$0xff]  ;;  %v654_v57 = vld [vmem:[%s1032_s3 + $0x10] sm:$0xff] }
  0x12   :  { %v88_v21 = vmul.f32 %v702_v3, %v71_v19  ;;  %v92_v25 = vmul.f32 %v702_v3, %v75_v23  ;;  %v106_v29 = vadd.f32 %v703_v4, %v89_v28  ;;  %v110_v33 = vadd.f32 %v703_v4, %v93_v32  ;;  %v79_v48 = vld [vmem:[%s1029_s0 + $0x60] sm:$0x3]  ;;  %v655_v56 = vld [vmem:[%s1032_s3 + $0x18] sm:$0xff]  ;;  %v704_v58 = vld [vmem:[#allocation5] ss:$0 sm:$0xff]  ;;  %s607_s0 = sshll.u32 %s815_s17, 4  ;;  %s608_s0 = int_to_ptr.vmem [resolvable:$true] %s607_s0 }
  0x13   :  { %v114_v9 = vmax.f32 %v101_v7, 0.0  ;;  %v115_v12 = vmax.f32 %v102_v10, 0.0  ;;  %v116_v16 = vmax.f32 %v103_v14, 0.0  ;;  %v117_v20 = vmax.f32 %v104_v18, 0.0  ;;  %298 = vmatpush.msra.mxu1 %v655_v56 }
  0x14   :  { %v105_v22 = vadd.f32 %v703_v4, %v88_v21  ;;  %v109_v26 = vadd.f32 %v703_v4, %v92_v25  ;;  %v119_v34 = vmax.f32 %v106_v29, 0.0  ;;  %v107_v36 = vadd.f32 %v703_v4, %v90_v35  ;;  %v669_v35 = vld [vmem:[%s1032_s3 + $0x20] sm:$0xff] }
  0x15   :  { %641 = vmatmul.msk.f32.vlgmr.msra.gmra.mxu0 %vm131_vm0, %v114_v9  ;;  %v94_v39 = vmul.f32 %v702_v3, %v77_v37  ;;  %v91_v42 = vmul.f32 %v702_v3, %v74_v38  ;;  %v95_v45 = vmul.f32 %v702_v3, %v78_v44  ;;  %v96_v49 = vmul.f32 %v702_v3, %v79_v48 }
  0x16   :  { %v118_v27 = vmax.f32 %v105_v22, 0.0  ;;  %v120_v41 = vmax.f32 %v107_v36, 0.0  ;;  %v122_v51 = vmax.f32 %v109_v26, 0.0  ;;  %v123_v52 = vmax.f32 %v110_v33, 0.0  ;;  %299 = vmatpush.msra.mxu1 %v654_v57  ;;  %v705_v36 = vld [vmem:[#allocation5 + $0x1] ss:$0 sm:$0xff] }
  0x17   :  { %v111_v40 = vadd.f32 %v703_v4, %v94_v39  ;;  %v108_v43 = vadd.f32 %v703_v4, %v91_v42  ;;  %v112_v46 = vadd.f32 %v703_v4, %v95_v45  ;;  %v113_v50 = vadd.f32 %v703_v4, %v96_v49 }
  0x19   :  { %v121_v47 = vmax.f32 %v108_v43, 0.0  ;;  %v124_v53 = vmax.f32 %v111_v40, 0.0  ;;  %v125_v54 = vmax.f32 %v112_v46, 0.0  ;;  %v126_v55 = vmax.f32 %v113_v50, 0.0 }
  0x1d   :  { %642 = vmatmul.msk.f32.gmra.mxu0 %vm131_vm0, %v115_v12 }
  0x25   :  { %643 = vmatmul.msk.f32.gmra.mxu0 %vm131_vm0, %v116_v16 }
  0x2d   :  { %644 = vmatmul.msk.f32.gmra.mxu0 %vm131_vm0, %v117_v20 }
  0x35   :  { %645 = vmatmul.msk.f32.gmra.mxu0 %vm131_vm0, %v118_v27 }
  0x3d   :  { %646 = vmatmul.msk.f32.gmra.mxu0 %vm131_vm0, %v119_v34  ;;  %v670_v34 = vld [vmem:[%s1032_s3 + $0x28] sm:$0xff] }
  0x3e   :  { %411 = vmatpush.msra.mxu2 %v670_v34 }
  0x40   :  { %412 = vmatpush.msra.mxu2 %v669_v35 }
  0x45   :  { %647 = vmatmul.msk.f32.gmra.mxu0 %vm131_vm0, %v120_v41 }
  0x4d   :  { %648 = vmatmul.msk.f32.gmra.mxu0 %vm131_vm0, %v121_v47 }
  0x55   :  { %649 = vmatmul.msk.f32.gmra.mxu0 %vm131_vm0, %v122_v51 }
  0x5d   :  { %650 = vmatmul.msk.f32.gmra.mxu0 %vm131_vm0, %v123_v52 }
  0x65   :  { %651 = vmatmul.msk.f32.gmra.mxu0 %vm131_vm0, %v124_v53 }
  0x6d   :  { %652 = vmatmul.msk.f32.gmra.mxu0 %vm131_vm0, %v125_v54 }
  0x75   :  { %653 = vmatmul.msk.f32.gmra.mxu0 %vm131_vm0, %v126_v55 }
  0x92   :  { %v188_v59 = vpop.f32.mrf.mxu0 }
  0x93   :  { %v189_v60 = vadd.f32 %v704_v58, %v188_v59 }
  0x95   :  { %v227_v61 = vmax.f32 %v189_v60, 0.0 }
  0x97   :  { %656 = vmatmul.msk.f32.vlgmr.msra.gmra.mxu1 %vm131_vm0, %v227_v61 }
  0x9a   :  { %v191_v62 = vpop.f32.mrf.mxu0 }
  0x9b   :  { %v192_v63 = vadd.f32 %v704_v58, %v191_v62 }
  0x9d   :  { %v228_v0 = vmax.f32 %v192_v63, 0.0 }
  0x9f   :  { %657 = vmatmul.msk.f32.gmra.mxu1 %vm131_vm0, %v228_v0 }
  0xa2   :  { %v194_v1 = vpop.f32.mrf.mxu0 }
  0xa3   :  { %v195_v2 = vadd.f32 %v704_v58, %v194_v1 }
  0xa5   :  { %v229_v3 = vmax.f32 %v195_v2, 0.0 }
  0xa7   :  { %658 = vmatmul.msk.f32.gmra.mxu1 %vm131_vm0, %v229_v3 }
  0xaa   :  { %v197_v4 = vpop.f32.mrf.mxu0 }
  0xab   :  { %v198_v5 = vadd.f32 %v704_v58, %v197_v4 }
  0xad   :  { %v230_v6 = vmax.f32 %v198_v5, 0.0 }
  0xaf   :  { %659 = vmatmul.msk.f32.gmra.mxu1 %vm131_vm0, %v230_v6 }
  0xb2   :  { %v200_v7 = vpop.f32.mrf.mxu0 }
  0xb3   :  { %v201_v8 = vadd.f32 %v704_v58, %v200_v7 }
  0xb5   :  { %v231_v9 = vmax.f32 %v201_v8, 0.0 }
  0xb7   :  { %660 = vmatmul.msk.f32.gmra.mxu1 %vm131_vm0, %v231_v9 }
  0xba   :  { %v203_v10 = vpop.f32.mrf.mxu0 }
  0xbb   :  { %v204_v11 = vadd.f32 %v704_v58, %v203_v10 }
  0xbd   :  { %v232_v12 = vmax.f32 %v204_v11, 0.0 }
  0xbf   :  { %661 = vmatmul.msk.f32.gmra.mxu1 %vm131_vm0, %v232_v12 }
  0xc2   :  { %v206_v13 = vpop.f32.mrf.mxu0 }
  0xc3   :  { %v207_v14 = vadd.f32 %v704_v58, %v206_v13 }
  0xc5   :  { %v233_v15 = vmax.f32 %v207_v14, 0.0 }
  0xc7   :  { %662 = vmatmul.msk.f32.gmra.mxu1 %vm131_vm0, %v233_v15 }
  0xca   :  { %v209_v16 = vpop.f32.mrf.mxu0 }
  0xcb   :  { %v210_v17 = vadd.f32 %v704_v58, %v209_v16 }
  0xcd   :  { %v234_v18 = vmax.f32 %v210_v17, 0.0 }
  0xcf   :  { %663 = vmatmul.msk.f32.gmra.mxu1 %vm131_vm0, %v234_v18 }
  0xd2   :  { %v212_v19 = vpop.f32.mrf.mxu0 }
  0xd3   :  { %v213_v20 = vadd.f32 %v704_v58, %v212_v19 }
  0xd5   :  { %v235_v21 = vmax.f32 %v213_v20, 0.0 }
  0xd7   :  { %664 = vmatmul.msk.f32.gmra.mxu1 %vm131_vm0, %v235_v21 }
  0xda   :  { %v215_v22 = vpop.f32.mrf.mxu0 }
  0xdb   :  { %v216_v23 = vadd.f32 %v704_v58, %v215_v22 }
  0xdd   :  { %v236_v24 = vmax.f32 %v216_v23, 0.0 }
  0xdf   :  { %665 = vmatmul.msk.f32.gmra.mxu1 %vm131_vm0, %v236_v24  ;;  %v706_v24 = vld [vmem:[#allocation5 + $0x2] ss:$0 sm:$0xff] }
  0xe2   :  { %v218_v25 = vpop.f32.mrf.mxu0 }
  0xe3   :  { %v219_v26 = vadd.f32 %v704_v58, %v218_v25 }
  0xe5   :  { %v237_v27 = vmax.f32 %v219_v26, 0.0 }
  0xe7   :  { %666 = vmatmul.msk.f32.gmra.mxu1 %vm131_vm0, %v237_v27 }
  0xea   :  { %v221_v28 = vpop.f32.mrf.mxu0 }
  0xeb   :  { %v222_v29 = vadd.f32 %v704_v58, %v221_v28 }
  0xed   :  { %v238_v30 = vmax.f32 %v222_v29, 0.0 }
  0xef   :  { %667 = vmatmul.msk.f32.gmra.mxu1 %vm131_vm0, %v238_v30 }
  0xf2   :  { %v224_v31 = vpop.f32.mrf.mxu0 }
  0xf3   :  { %v225_v32 = vadd.f32 %v704_v58, %v224_v31 }
  0xf5   :  { %v239_v33 = vmax.f32 %v225_v32, 0.0 }
  0xf7   :  { %668 = vmatmul.msk.f32.gmra.mxu1 %vm131_vm0, %v239_v33 }
 0x114   :  { %v301_v37 = vpop.f32.mrf.mxu1 }
 0x115   :  { %v302_v38 = vadd.f32 %v705_v36, %v301_v37 }
 0x117   :  { %v340_v39 = vmax.f32 %v302_v38, 0.0 }
 0x119   :  { %671 = vmatmul.msk.f32.vlgmr.msra.gmra.mxu2 %vm131_vm0, %v340_v39  ;;  %v453_v39 = vld [vmem:[%s1034_s5] sm:$0xff] }
 0x11c   :  { %v304_v40 = vpop.f32.mrf.mxu1 }
 0x11d   :  { %v305_v41 = vadd.f32 %v705_v36, %v304_v40  ;;  %v511_v40 = vld [vmem:[%s1035_s6 + $0x8] sm:$0xff] }
 0x11f   :  { %v341_v42 = vmax.f32 %v305_v41, 0.0  ;;  %v510_v41 = vld [vmem:[%s1035_s6] sm:$0xff] }
 0x121   :  { %672 = vmatmul.msk.f32.gmra.mxu2 %vm131_vm0, %v341_v42  ;;  %v454_v42 = vld [vmem:[%s1034_s5 + $0x8] sm:$0xff] }
 0x124   :  { %v307_v43 = vpop.f32.mrf.mxu1 }
 0x125   :  { %v308_v44 = vadd.f32 %v705_v36, %v307_v43  ;;  %v455_v43 = vld [vmem:[%s1034_s5 + $0x10] sm:$0xff] }
 0x127   :  { %v342_v45 = vmax.f32 %v308_v44, 0.0  ;;  %v456_v44 = vld [vmem:[%s1034_s5 + $0x18] sm:$0xff] }
 0x129   :  { %673 = vmatmul.msk.f32.gmra.mxu2 %vm131_vm0, %v342_v45  ;;  %v457_v45 = vld [vmem:[%s1034_s5 + $0x20] sm:$0xff] }
 0x12c   :  { %v310_v46 = vpop.f32.mrf.mxu1 }
 0x12d   :  { %v311_v47 = vadd.f32 %v705_v36, %v310_v46  ;;  %v555_v46 = vld [vmem:[%s1037_s8 + $0x8] sm:$0xff] }
 0x12f   :  { %v343_v48 = vmax.f32 %v311_v47, 0.0  ;;  %v554_v47 = vld [vmem:[%s1037_s8] sm:$0xff] }
 0x131   :  { %674 = vmatmul.msk.f32.gmra.mxu2 %vm131_vm0, %v343_v48 }
 0x134   :  { %v313_v49 = vpop.f32.mrf.mxu1 }
 0x135   :  { %v314_v50 = vadd.f32 %v705_v36, %v313_v49 }
 0x137   :  { %v344_v51 = vmax.f32 %v314_v50, 0.0 }
 0x139   :  { %675 = vmatmul.msk.f32.gmra.mxu2 %vm131_vm0, %v344_v51 }
 0x13c   :  { %v316_v52 = vpop.f32.mrf.mxu1 }
 0x13d   :  { %v317_v53 = vadd.f32 %v705_v36, %v316_v52 }
 0x13f   :  { %v345_v54 = vmax.f32 %v317_v53, 0.0 }
 0x141   :  { %676 = vmatmul.msk.f32.gmra.mxu2 %vm131_vm0, %v345_v54 }
 0x144   :  { %v319_v55 = vpop.f32.mrf.mxu1 }
 0x145   :  { %v320_v56 = vadd.f32 %v705_v36, %v319_v55 }
 0x147   :  { %v346_v57 = vmax.f32 %v320_v56, 0.0 }
 0x149   :  { %677 = vmatmul.msk.f32.gmra.mxu2 %vm131_vm0, %v346_v57 }
 0x14c   :  { %v322_v58 = vpop.f32.mrf.mxu1 }
 0x14d   :  { %v323_v59 = vadd.f32 %v705_v36, %v322_v58  ;;  %v707_v58 = vld [vmem:[%s1036_s7] ss:$0 sm:$0xff] }
 0x14f   :  { %v347_v60 = vmax.f32 %v323_v59, 0.0 }
 0x151   :  { %678 = vmatmul.msk.f32.gmra.mxu2 %vm131_vm0, %v347_v60 }
 0x154   :  { %v325_v61 = vpop.f32.mrf.mxu1 }
 0x155   :  { %v326_v62 = vadd.f32 %v705_v36, %v325_v61 }
 0x157   :  { %v348_v63 = vmax.f32 %v326_v62, 0.0 }
 0x159   :  { %679 = vmatmul.msk.f32.gmra.mxu2 %vm131_vm0, %v348_v63 }
 0x15c   :  { %v328_v0 = vpop.f32.mrf.mxu1 }
 0x15d   :  { %v329_v1 = vadd.f32 %v705_v36, %v328_v0 }
 0x15f   :  { %v349_v2 = vmax.f32 %v329_v1, 0.0  ;;  %v708_v1 = vld [vmem:[%s1038_s9] ss:$0 sm:$0xff] }
 0x161   :  { %680 = vmatmul.msk.f32.gmra.mxu2 %vm131_vm0, %v349_v2 }
 0x164   :  { %v331_v3 = vpop.f32.mrf.mxu1 }
 0x165   :  { %v332_v4 = vadd.f32 %v705_v36, %v331_v3 }
 0x167   :  { %v350_v5 = vmax.f32 %v332_v4, 0.0 }
 0x169   :  { %681 = vmatmul.msk.f32.gmra.mxu2 %vm131_vm0, %v350_v5 }
 0x16c   :  { %v334_v6 = vpop.f32.mrf.mxu1 }
 0x16d   :  { %v335_v7 = vadd.f32 %v705_v36, %v334_v6 }
 0x16f   :  { %v351_v8 = vmax.f32 %v335_v7, 0.0 }
 0x171   :  { %682 = vmatmul.msk.f32.gmra.mxu2 %vm131_vm0, %v351_v8 }
 0x174   :  { %v337_v9 = vpop.f32.mrf.mxu1 }
 0x175   :  { %v338_v10 = vadd.f32 %v705_v36, %v337_v9 }
 0x177   :  { %v352_v11 = vmax.f32 %v338_v10, 0.0 }
 0x179   :  { %683 = vmatmul.msk.f32.gmra.mxu2 %vm131_vm0, %v352_v11 }
 0x19c   :  { %v414_v12 = vpop.f32.mrf.mxu2 }
 0x19d   :  { %v415_v38 = vadd.f32 %v706_v24, %v414_v12 }
 0x1a4   :  { %v417_v13 = vpop.f32.mrf.mxu2 }
 0x1a5   :  { %v418_v37 = vadd.f32 %v706_v24, %v417_v13 }
 0x1ac   :  { %v420_v14 = vpop.f32.mrf.mxu2 }
 0x1ad   :  { %v421_v36 = vadd.f32 %v706_v24, %v420_v14 }
 0x1b4   :  { %v423_v15 = vpop.f32.mrf.mxu2 }
 0x1b5   :  { %v424_v35 = vadd.f32 %v706_v24, %v423_v15 }
 0x1bc   :  { %v426_v16 = vpop.f32.mrf.mxu2 }
 0x1bd   :  { %v427_v34 = vadd.f32 %v706_v24, %v426_v16 }
 0x1c4   :  { %v429_v17 = vpop.f32.mrf.mxu2 }
 0x1c5   :  { %v430_v33 = vadd.f32 %v706_v24, %v429_v17 }
 0x1cc   :  { %v432_v18 = vpop.f32.mrf.mxu2 }
 0x1cd   :  { %v433_v32 = vadd.f32 %v706_v24, %v432_v18 }
 0x1d4   :  { %v435_v19 = vpop.f32.mrf.mxu2 }
 0x1d5   :  { %v436_v31 = vadd.f32 %v706_v24, %v435_v19 }
 0x1dc   :  { %v438_v20 = vpop.f32.mrf.mxu2 }
 0x1dd   :  { %v439_v30 = vadd.f32 %v706_v24, %v438_v20 }
 0x1e4   :  { %v441_v21 = vpop.f32.mrf.mxu2 }
 0x1e5   :  { %v442_v29 = vadd.f32 %v706_v24, %v441_v21 }
 0x1ec   :  { %v444_v22 = vpop.f32.mrf.mxu2 }
 0x1ed   :  { %v445_v28 = vadd.f32 %v706_v24, %v444_v22 }
 0x1f4   :  { %v447_v23 = vpop.f32.mrf.mxu2 }
 0x1f5   :  { %v448_v27 = vadd.f32 %v706_v24, %v447_v23 }
 0x1fc   :  { %v450_v25 = vpop.f32.mrf.mxu2 }
 0x1fd   :  { %v451_v26 = vadd.f32 %v706_v24, %v450_v25 }
 0x1ff   :  { %684 = vmatpush.msk.msra.mxu3 %vm474_vm1, %v451_v26 }
 0x201   :  { %482 = vmatpush.msra.mxu3 %v448_v27 }
 0x203   :  { %483 = vmatpush.msra.mxu3 %v445_v28 }
 0x205   :  { %484 = vmatpush.msra.mxu3 %v442_v29 }
 0x207   :  { %485 = vmatpush.msra.mxu3 %v439_v30 }
 0x209   :  { %486 = vmatpush.msra.mxu3 %v436_v31 }
 0x20b   :  { %487 = vmatpush.msra.mxu3 %v433_v32 }
 0x20d   :  { %488 = vmatpush.msra.mxu3 %v430_v33 }
 0x20f   :  { %489 = vmatpush.msra.mxu3 %v427_v34 }
 0x211   :  { %490 = vmatpush.msra.mxu3 %v424_v35 }
 0x213   :  { %491 = vmatpush.msra.mxu3 %v421_v36 }
 0x215   :  { %492 = vmatpush.msra.mxu3 %v418_v37 }
 0x217   :  { %493 = vmatpush.msra.mxu3 %v415_v38 }
 0x218   :  { %685 = vmatmul.msk.f32.vlgmr.msra.gmra.mxu3 %vm458_vm2, %v453_v39 }
 0x219   :  { %539 = vmatpush.msrb.mxu3 %v511_v40 }
 0x21b   :  { %540 = vmatpush.msrb.mxu3 %v510_v41 }
 0x21d   :  { %588 = vmatpush.msra.mxu3 %v555_v46 }
 0x21f   :  { %589 = vmatpush.msra.mxu3 %v554_v47 }
 0x220   :  { %686 = vmatmul.msk.f32.gmra.mxu3 %vm458_vm2, %v454_v42 }
 0x228   :  { %687 = vmatmul.msk.f32.gmra.mxu3 %vm458_vm2, %v455_v43 }
 0x230   :  { %688 = vmatmul.msk.f32.gmra.mxu3 %vm458_vm2, %v456_v44 }
 0x238   :  { %689 = vmatmul.msk.f32.gmra.mxu3 %vm458_vm2, %v457_v45 }
 0x29b   :  { %v495_v48 = vpop.f32.mrf.mxu3 }
 0x29c   :  { %690 = vmatmul.msk.f32.vlgmr.msrb.gmra.mxu3 %vm131_vm0, %v495_v48 }
 0x2a3   :  { %v498_v49 = vpop.f32.mrf.mxu3 }
 0x2a4   :  { %691 = vmatmul.msk.f32.gmra.mxu3 %vm131_vm0, %v498_v49 }
 0x2ab   :  { %v501_v50 = vpop.f32.mrf.mxu3 }
 0x2ac   :  { %692 = vmatmul.msk.f32.gmra.mxu3 %vm131_vm0, %v501_v50  ;;  %v563_v52 = vrot.slane %v501_v50, 4 }
 0x2b3   :  { %v504_v51 = vpop.f32.mrf.mxu3 }
 0x2b4   :  { %v564_v53 = vrot.slane %v504_v51, 4 }
 0x2b6   :  { %v565_v54 = vsel %vm562_vm3, %v563_v52, %v564_v53 }
 0x2b7   :  { %693 = vmatmul.msk.f32.vlgmr.msra.gmra.mxu3 %vm131_vm0, %v565_v54 }
 0x2bb   :  { %v507_v55 = vpop.f32.mrf.mxu3 }
 0x2bc   :  { %v566_v56 = vrot.slane %v507_v55, 4 }
 0x2be   :  { %v567_v57 = vsel %vm562_vm3, %v564_v53, %v566_v56 }
 0x2bf   :  { %694 = vmatmul.msk.f32.gmra.mxu3 %vm131_vm0, %v567_v57 }
 0x2c7   :  { %695 = vmatmul.msk.f32.gmra.mxu3 %vm131_vm0, %v566_v56 }
 0x31f   :  { %v542_v59 = vpop.f32.mrf.mxu3 }
 0x320   :  { %v543_v60 = vadd.f32 %v707_v58, %v542_v59 }
 0x322   :  { %551 = vst [vmem:[#allocation7] sm:$0xff] %v543_v60 }
 0x327   :  { %v545_v61 = vpop.f32.mrf.mxu3 }
 0x328   :  { %v546_v62 = vadd.f32 %v707_v58, %v545_v61 }
 0x32a   :  { %552 = vst [vmem:[#allocation7 + $0x8] sm:$0xff] %v546_v62 }
 0x32f   :  { %v548_v63 = vpop.f32.mrf.mxu3 }
 0x330   :  { %v549_v0 = vadd.f32 %v707_v58, %v548_v63 }
 0x332   :  { %553 = vst [vmem:[#allocation7 + $0x10] sm:$0xf] %v549_v0 }
 0x333   :  { %615 = dma.vmem_to_hbm [thread:$0]  %s608_s0, 384, %s610_s19, [#allocation4], %s816_s20, %s816_s20, %s817_s21  }
 0x33a   :  { %v591_v2 = vpop.f32.mrf.mxu3 }
 0x33b   :  { %v592_v3 = vadd.f32 %v708_v1, %v591_v2 }
 0x33d   :  { %600 = vst [vmem:[#allocation8] sm:$0xff] %v592_v3 }
 0x342   :  { %v594_v4 = vpop.f32.mrf.mxu3 }
 0x343   :  { %v595_v5 = vadd.f32 %v708_v1, %v594_v4 }
 0x345   :  { %601 = vst [vmem:[#allocation8 + $0x8] sm:$0xff] %v595_v5 }
 0x34a   :  { %v597_v6 = vpop.f32.mrf.mxu3 }
 0x34b   :  { %v598_v7 = vadd.f32 %v708_v1, %v597_v6 }
 0x34d   :  { %602 = vst [vmem:[#allocation8 + $0x10] sm:$0xf] %v598_v7 }
 0x34e   :  { %628 = dma.vmem_to_hbm [thread:$0]  %s621_s10, 384, %s623_s25, [#allocation9], %s816_s20, %s816_s20, %s817_s21  }
 0x34f   :  { %809 = dma.done.wait [#allocation4], 384  }
 0x350   :  { %810 = vsyncadd [#allocation4], 4294966912 }
 0x351   :  { %811 = dma.done.wait [#allocation9], 384  }
 0x352   :  { %812 = vsyncadd [#allocation9], 4294966912 }
 0x353   :  { %637 = vsyncpa [#allocation3], 1 }
 0x354   :  { %638 = vsyncpa [#allocation6], 1 }
 0x355   :  { %639 = vsyncpa [#allocation4], 1 }
 0x356   :  { %640 = vsyncpa [#allocation9], 1 }

</bundles_post_ra>
